<compile_context>
chip_gen: v5e
topology: v5e:2x2
jax: 0.10.0
libtpu: 0.0.40
codegen_flags: <defaults>
</compile_context>

<pallas_src>
import math
from functools import partial

import jax
import jax.numpy as jnp
from jax.experimental import pallas as pl
from jax.experimental.pallas import tpu as pltpu


# ----------------------------- tiling helpers --------------------------------

_SUBLANE = 8  # f32 sublane packing


def _pick_row_tile(n_rows, row_bytes, target_bytes=2 * 1024 * 1024):
    """Largest row tile (multiple of 8, or full extent) within ~target_bytes."""
    budget_rows = max(_SUBLANE, target_bytes // max(int(row_bytes), 1))
    if budget_rows >= n_rows:
        return n_rows  # full extent is always a legal block shape
    t = budget_rows - (budget_rows % _SUBLANE)
    return max(_SUBLANE, t)


def _largest_divisor_tile(n, target):
    """Largest divisor of n that is <= target (exact tiling, no ragged edge)."""
    if n <= target:
        return n
    for d in range(target, 0, -1):
        if n % d == 0:
            return d
    return 1


def _pick_k_tile(k_dim, target=512):
    """K (reduction) tile: must divide K exactly and be lane-aligned."""
    if k_dim <= target:
        return k_dim
    for d in range(target - target % 128, 0, -128):
        if k_dim % d == 0:
            return d
    return k_dim


def _pick_col_tile(n_cols, target=512):
    if n_cols > target and n_cols % 128 == 0:
        return target  # 512 is a multiple of 128
    return n_cols


# ------------------------------- LayerNorm -----------------------------------
# Standalone LN is only used as a fallback when the reduction dim is too large
# to fit a single K tile of the following matmul (not the case in the demo).

def _layernorm_kernel(x_ref, w_ref, b_ref, o_ref, *, eps):
    x = x_ref[...].astype(jnp.float32)
    mean = jnp.mean(x, axis=-1, keepdims=True)
    xc = x - mean
    var = jnp.mean(xc * xc, axis=-1, keepdims=True)
    inv = jax.lax.rsqrt(var + eps)
    y = xc * inv * w_ref[...].astype(jnp.float32) + b_ref[...].astype(jnp.float32)
    o_ref[...] = y.astype(o_ref.dtype)


def layer_norm(x, weight, bias, *, eps=1e-5):
    orig_shape = x.shape
    dim = orig_shape[-1]
    x2 = x.reshape(-1, dim)
    n_rows = x2.shape[0]
    tile = _pick_row_tile(n_rows, dim * x2.dtype.itemsize)
    grid = (pl.cdiv(n_rows, tile),)
    out = pl.pallas_call(
        partial(_layernorm_kernel, eps=eps),
        out_shape=jax.ShapeDtypeStruct((n_rows, dim), x.dtype),
        grid_spec=pltpu.PrefetchScalarGridSpec(
            num_scalar_prefetch=0,
            grid=grid,
            in_specs=[
                pl.BlockSpec((tile, dim), lambda i: (i, 0)),
                pl.BlockSpec((1, dim), lambda i: (0, 0)),   # resident
                pl.BlockSpec((1, dim), lambda i: (0, 0)),   # resident
            ],
            out_specs=pl.BlockSpec((tile, dim), lambda i: (i, 0)),
        ),
        compiler_params=pltpu.CompilerParams(dimension_semantics=("parallel",)),
    )(x2, weight.reshape(1, dim), bias.reshape(1, dim))
    return out.reshape(orig_shape)


# ----------------- fused LN-prologue matmul with fused epilogue ---------------

def _gelu_tanh(x):
    # TODO(synk): torch nn.GELU default is the exact erf form; tanh approximation
    # is used because it lowers to a single guaranteed EUP op on Mosaic.
    c = 0.7978845608028654  # sqrt(2/pi)
    return 0.5 * x * (1.0 + jnp.tanh(c * (x + 0.044715 * x * x * x)))


def _linear_kernel(*refs, has_ln, has_res, two_out, activation, eps):
    it = iter(refs)
    x_ref = next(it)
    w_ref = next(it)
    b_ref = next(it)
    lnw_ref = next(it) if has_ln else None
    lnb_ref = next(it) if has_ln else None
    res_ref = next(it) if has_res else None
    g_ref = next(it) if has_res else None
    o_ref = next(it)
    o2_ref = next(it) if two_out else None
    acc_ref = next(it)

    k_idx = pl.program_id(2)

    @pl.when(k_idx == 0)
    def _init():
        acc_ref[...] = jnp.zeros_like(acc_ref)

    x = x_ref[...]
    if has_ln:
        # Full feature row is present in this K tile (guaranteed by wrapper),
        # so LayerNorm can be computed in the prologue.
        xf = x.astype(jnp.float32)
        mean = jnp.mean(xf, axis=-1, keepdims=True)
        xc = xf - mean
        var = jnp.mean(xc * xc, axis=-1, keepdims=True)
        xn = xc * jax.lax.rsqrt(var + eps) * lnw_ref[...].astype(jnp.float32)
        xn = xn + lnb_ref[...].astype(jnp.float32)
        x = xn.astype(x_ref.dtype)

    acc_ref[...] += jnp.dot(x, w_ref[...], preferred_element_type=jnp.float32)

    @pl.when(k_idx == pl.num_programs(2) - 1)
    def _finish():
        y = acc_ref[...] + b_ref[...].astype(jnp.float32)
        if activation == "gelu":
            y = _gelu_tanh(y)
        if has_res:
            # residual + LayerScale fused epilogue: x + gamma * branch (f32).
            x_new = res_ref[...].astype(jnp.float32) + y * g_ref[...]
            o_ref[...] = x_new.astype(o_ref.dtype)
            if two_out:
                o2_ref[...] = y.astype(o2_ref.dtype)
        else:
            o_ref[...] = y.astype(o_ref.dtype)


def fused_linear(x, w, b=None, *, activation=None, ln=None, ln_eps=1e-5,
                 residual=None, gamma=None, return_pre_residual=False):
    """y = [LN](x) @ w + b, optional GELU, optional fused residual+LayerScale.

    Returns:
      residual is None:                              y
      residual given, return_pre_residual=False:     residual + gamma*y
      residual given, return_pre_residual=True:      (residual + gamma*y, y)
    """
    orig_shape = x.shape
    K = orig_shape[-1]
    N = w.shape[1]

    tk = _pick_k_tile(K)
    fuse_ln = ln is not None and tk == K
    if ln is not None and not fuse_ln:
        # K does not fit a single reduction tile -> standalone LN fallback.
        x = layer_norm(x, ln[0], ln[1], eps=ln_eps)

    x2 = x.reshape(-1, K)
    M = x2.shape[0]
    if b is None:
        b = jnp.zeros((N,), jnp.float32)
    b2 = b.reshape(1, N).astype(jnp.float32)

    tn = _pick_col_tile(N)
    tm = _pick_row_tile(M, (tk + 2 * tn) * 4)
    grid = (pl.cdiv(M, tm), pl.cdiv(N, tn), K // tk)

    has_res = residual is not None
    two_out = has_res and return_pre_residual

    in_specs = [
        pl.BlockSpec((tm, tk), lambda i, j, k: (i, k)),
        pl.BlockSpec((tk, tn), lambda i, j, k: (k, j)),
        pl.BlockSpec((1, tn), lambda i, j, k: (0, j)),    # bias: j-resident
    ]
    args = [x2, w, b2]
    if fuse_ln:
        ln_spec = pl.BlockSpec((1, tk), lambda i, j, k: (0, k))  # resident
        in_specs += [ln_spec, ln_spec]
        args += [ln[0].reshape(1, K).astype(jnp.float32),
                 ln[1].reshape(1, K).astype(jnp.float32)]
    if has_res:
        if gamma is None:
            gamma = jnp.ones((N,), jnp.float32)
        in_specs += [
            pl.BlockSpec((tm, tn), lambda i, j, k: (i, j)),  # k-resident
            pl.BlockSpec((1, tn), lambda i, j, k: (0, j)),   # gamma resident
        ]
        args += [residual.reshape(-1, N), gamma.reshape(1, N).astype(jnp.float32)]

    out_block = pl.BlockSpec((tm, tn), lambda i, j, k: (i, j))
    if two_out:
        out_shape = (jax.ShapeDtypeStruct((M, N), x.dtype),
                     jax.ShapeDtypeStruct((M, N), x.dtype))
        out_specs = [out_block, out_block]
    else:
        out_shape = jax.ShapeDtypeStruct((M, N), x.dtype)
        out_specs = out_block

    outs = pl.pallas_call(
        partial(_linear_kernel, has_ln=fuse_ln, has_res=has_res,
                two_out=two_out, activation=activation, eps=ln_eps),
        out_shape=out_shape,
        grid_spec=pltpu.PrefetchScalarGridSpec(
            num_scalar_prefetch=0,
            grid=grid,
            in_specs=in_specs,
            out_specs=out_specs,
            scratch_shapes=[pltpu.VMEM((tm, tn), jnp.float32)],
        ),
        compiler_params=pltpu.CompilerParams(
            dimension_semantics=("parallel", "parallel", "arbitrary")),
    )(*args)

    out_lead = orig_shape[:-1]
    if two_out:
        y_res, y_pre = outs
        return y_res.reshape(out_lead + (N,)), y_pre.reshape(out_lead + (N,))
    return outs.reshape(out_lead + (N,))


# --------------------------- attention core (softmax) -------------------------

def _attn_kernel(q_ref, k_ref, v_ref, o_ref, *, scale):
    q = q_ref[...].astype(jnp.float32)
    k = k_ref[...].astype(jnp.float32)
    v = v_ref[...].astype(jnp.float32)
    s = jnp.einsum("bqd,bkd->bqk", q, k,
                   preferred_element_type=jnp.float32) * scale
    s = s - jnp.max(s, axis=-1, keepdims=True)
    p = jnp.exp(s)
    p = p * pl.reciprocal(jnp.sum(p, axis=-1, keepdims=True), approx=False)
    o = jnp.einsum("bqk,bkd->bqd", p, v, preferred_element_type=jnp.float32)
    o_ref[...] = o.astype(o_ref.dtype)


def attention_core(q, k, v, *, scale):
    """q, k, v: (B*H, N, head_dim) -> softmax(q k^T * scale) v, same shape."""
    BH, N, hd = q.shape
    bh_tile = _largest_divisor_tile(BH, 8)   # exact tiling over heads
    grid = (BH // bh_tile,)
    spec = pl.BlockSpec((bh_tile, N, hd), lambda i: (i, 0, 0))
    return pl.pallas_call(
        partial(_attn_kernel, scale=scale),
        out_shape=jax.ShapeDtypeStruct((BH, N, hd), q.dtype),
        grid_spec=pltpu.PrefetchScalarGridSpec(
            num_scalar_prefetch=0,
            grid=grid,
            in_specs=[spec, spec, spec],
            out_specs=spec,
        ),
        compiler_params=pltpu.CompilerParams(dimension_semantics=("parallel",)),
    )(q, k, v)


# --------------------------------- BlockDS ------------------------------------

class BlockDSJax:
    """Forward-pass mirror of the PyTorch BlockDS (eval mode, dropout = 0)."""

    def __init__(self, dim, num_heads, mlp_ratio=4.0, qkv_bias=False,
                 init_values=None, *, key):
        assert dim % num_heads == 0
        self.dim = dim
        self.num_heads = num_heads
        self.head_dim = dim // num_heads
        self.scale = self.head_dim ** -0.5
        hidden = int(dim * mlp_ratio)

        ks = jax.random.split(key, 6)
        std = 0.02
        # Weights stored as (in, out): the torch (out, in) layout pre-transposed
        # once at init so kernels compute x @ W directly.
        self.qkv_w = std * jax.random.normal(ks[0], (dim, 3 * dim), jnp.float32)
        self.qkv_b = jnp.zeros((3 * dim,), jnp.float32) if qkv_bias else None
        self.proj_w = std * jax.random.normal(ks[1], (dim, dim), jnp.float32)
        self.proj_b = std * jax.random.normal(ks[2], (dim,), jnp.float32)
        self.fc1_w = std * jax.random.normal(ks[3], (dim, hidden), jnp.float32)
        self.fc1_b = std * jax.random.normal(ks[4], (hidden,), jnp.float32)
        self.fc2_w = std * jax.random.normal(ks[5], (hidden, dim), jnp.float32)
        self.fc2_b = jnp.zeros((dim,), jnp.float32)

        self.norm1_w = jnp.ones((dim,), jnp.float32)
        self.norm1_b = jnp.zeros((dim,), jnp.float32)
        self.norm2_w = jnp.ones((dim,), jnp.float32)
        self.norm2_b = jnp.zeros((dim,), jnp.float32)

        if init_values is not None:
            self.gamma1 = init_values * jnp.ones((dim,), jnp.float32)
            self.gamma2 = init_values * jnp.ones((dim,), jnp.float32)
        else:
            # nn.Identity path: x + 1.0*y is bitwise identical to x + y, so the
            # same fused residual epilogue serves both cases.
            self.gamma1 = jnp.ones((dim,), jnp.float32)
            self.gamma2 = jnp.ones((dim,), jnp.float32)

    def __call__(self, x):
        B, N, C = x.shape
        H, hd = self.num_heads, self.head_dim

        # LN1 fused into the qkv matmul prologue.
        qkv_tmp = fused_linear(x, self.qkv_w, self.qkv_b,
                               ln=(self.norm1_w, self.norm1_b))    # (B, N, 3C)
        q_out = qkv_tmp[..., :C]
        k_out = qkv_tmp[..., C:2 * C]
        v_out = qkv_tmp[..., 2 * C:]

        def to_heads(t):  # (B, N, C) -> (B*H, N, hd)
            return t.reshape(B, N, H, hd).transpose(0, 2, 1, 3).reshape(B * H, N, hd)

        ctx = attention_core(to_heads(q_out), to_heads(k_out), to_heads(v_out),
                             scale=self.scale)                     # (B*H, N, hd)
        ctx = ctx.reshape(B, H, N, hd).transpose(0, 2, 1, 3).reshape(B, N, C)

        # proj matmul with fused residual + LayerScale epilogue: x1 = x + g1*proj
        x1 = fused_linear(ctx, self.proj_w, self.proj_b,
                          residual=x, gamma=self.gamma1)

        # LN2 fused into fc1 matmul prologue; GELU fused into its epilogue.
        hid = fused_linear(x1, self.fc1_w, self.fc1_b, activation="gelu",
                           ln=(self.norm2_w, self.norm2_b))

        # fc2 matmul with fused residual epilogue; also emits pre-residual
        # hidden_out (the module's third return value) from the same acc.
        x2, hidden_out = fused_linear(hid, self.fc2_w, self.fc2_b,
                                      residual=x1, gamma=self.gamma2,
                                      return_pre_residual=True)
        return x2, (q_out, k_out, v_out), hidden_out


# ----------------------------- pure-JAX reference -----------------------------

def block_ds_reference(m, x):
    P = jax.lax.Precision.HIGHEST
    B, N, C = x.shape
    H, hd = m.num_heads, m.head_dim

    def ln(t, w, b):
        t32 = t.astype(jnp.float32)
        mean = jnp.mean(t32, axis=-1, keepdims=True)
        var = jnp.mean((t32 - mean) ** 2, axis=-1, keepdims=True)
        return ((t32 - mean) * jax.lax.rsqrt(var + 1e-5) * w + b).astype(t.dtype)

    def lin(t, w, b):
        y = jnp.einsum("...k,kn->...n", t.astype(jnp.float32), w, precision=P)
        if b is not None:
            y = y + b
        return y.astype(t.dtype)

    def gelu(t):
        c = 0.7978845608028654
        return 0.5 * t * (1.0 + jnp.tanh(c * (t + 0.044715 * t ** 3)))

    h1 = ln(x, m.norm1_w, m.norm1_b)
    qkv = lin(h1, m.qkv_w, m.qkv_b)
    q, k, v = qkv[..., :C], qkv[..., C:2 * C], qkv[..., 2 * C:]
    qh = q.reshape(B, N, H, hd).transpose(0, 2, 1, 3)
    kh = k.reshape(B, N, H, hd).transpose(0, 2, 1, 3)
    vh = v.reshape(B, N, H, hd).transpose(0, 2, 1, 3)
    s = jnp.einsum("bhqd,bhkd->bhqk", qh, kh, precision=P) * m.scale
    p = jax.nn.softmax(s, axis=-1)
    ctx = jnp.einsum("bhqk,bhkd->bhqd", p, vh, precision=P)
    ctx = ctx.transpose(0, 2, 1, 3).reshape(B, N, C)
    attn_out = lin(ctx, m.proj_w, m.proj_b)
    x1 = x + m.gamma1 * attn_out
    h2 = ln(x1, m.norm2_w, m.norm2_b)
    hid = gelu(lin(h2, m.fc1_w, m.fc1_b))
    hidden_out = lin(hid, m.fc2_w, m.fc2_b)
    x2 = x1 + m.gamma2 * hidden_out
    return x2, (q, k, v), hidden_out


# ----------------------------------- demo -------------------------------------

if __name__ == "__main__":
    key = jax.random.PRNGKey(0)
    k_x, k_w = jax.random.split(key)
    B, N, dim, heads = 2, 8, 32, 4
    x = jax.random.normal(k_x, (B, N, dim), dtype=jnp.float32)

    block = BlockDSJax(dim, heads, mlp_ratio=4.0, qkv_bias=False,
                       init_values=1e-5, key=k_w)

    y, (q, k, v), hidden = block(x)
    y = jax.block_until_ready(y)

    y_ref, (q_ref, k_ref, v_ref), hidden_ref = block_ds_reference(block, x)

    assert y.shape == x.shape and y.dtype == x.dtype
    for got, ref in ((y, y_ref), (q, q_ref), (k, k_ref), (v, v_ref),
                     (hidden, hidden_ref)):
        err = float(jnp.max(jnp.abs(got - ref)))
        assert jnp.allclose(got, ref, atol=2e-3, rtol=2e-3), err

    print("KERNEL_OK")
</pallas_src>

<mosaic_0001>
module attributes {stable_mosaic.version = 11 : i64} {
  func.func @_linear_kernel(%arg0: i32, %arg1: i32, %arg2: i32, %arg3: memref<16x32xf32, #tpu.memory_space<vmem>>, %arg4: memref<32x96xf32, #tpu.memory_space<vmem>>, %arg5: memref<1x96xf32, #tpu.memory_space<vmem>>, %arg6: memref<1x32xf32, #tpu.memory_space<vmem>>, %arg7: memref<1x32xf32, #tpu.memory_space<vmem>>, %arg8: memref<16x96xf32, #tpu.memory_space<vmem>>, %arg9: memref<16x96xf32, #tpu.memory_space<vmem>>) attributes {dimension_semantics = [#tpu.dimension_semantics<parallel>, #tpu.dimension_semantics<parallel>, #tpu.dimension_semantics<arbitrary>], iteration_bounds = array<i64: 1, 1, 1>, scalar_prefetch = 0 : i64, scratch_operands = 1 : i64, tpu.core_type = #tpu.core_type<tc>, window_params = [{transform_indices = @transform_0, window_bounds = array<i64: 16, 32>}, {transform_indices = @transform_1, window_bounds = array<i64: 32, 96>}, {transform_indices = @transform_2, window_bounds = array<i64: 1, 96>}, {transform_indices = @transform_3, window_bounds = array<i64: 1, 32>}, {transform_indices = @transform_4, window_bounds = array<i64: 1, 32>}, {transform_indices = @transform_5, window_bounds = array<i64: 16, 96>}]} {
    %c0_i32 = arith.constant 0 : i32
    %0 = arith.cmpi eq, %arg2, %c0_i32 : i32
    %1 = arith.extui %0 : i1 to i32
    %c0_i32_0 = arith.constant 0 : i32
    %2 = arith.cmpi ne, %1, %c0_i32_0 : i32
    scf.if %2 {
      %cst_19 = arith.constant 0.000000e+00 : f32
      %34 = vector.broadcast %cst_19 : f32 to vector<16x96xf32>
      %c0_20 = arith.constant 0 : index
      %c0_21 = arith.constant 0 : index
      %35 = vector.load %arg9[%c0_20, %c0_21] : memref<16x96xf32, #tpu.memory_space<vmem>>, vector<16x96xf32>
      tpu.vector_store %arg9[%c0_20, %c0_21], %34 {strides = array<i32>} : memref<16x96xf32, #tpu.memory_space<vmem>>, vector<16x96xf32>,
    } else {
    }
    %c0 = arith.constant 0 : index
    %c0_1 = arith.constant 0 : index
    %3 = vector.load %arg3[%c0, %c0_1] : memref<16x32xf32, #tpu.memory_space<vmem>>, vector<16x32xf32>
    %cst = arith.constant dense<0.000000e+00> : vector<16xf32>
    %4 = vector.multi_reduction <add>, %3, %cst [1] : vector<16x32xf32> to vector<16xf32>
    %5 = vector.shape_cast %4 : vector<16xf32> to vector<16x1xf32>
    %cst_2 = arith.constant 3.200000e+01 : f32
    %6 = vector.broadcast %cst_2 : f32 to vector<16x1xf32>
    %7 = arith.divf %5, %6 : vector<16x1xf32>
    %8 = vector.broadcast %7 : vector<16x1xf32> to vector<16x32xf32>
    %9 = arith.subf %3, %8 : vector<16x32xf32>
    %10 = arith.mulf %9, %9 : vector<16x32xf32>
    %cst_3 = arith.constant dense<0.000000e+00> : vector<16xf32>
    %11 = vector.multi_reduction <add>, %10, %cst_3 [1] : vector<16x32xf32> to vector<16xf32>
    %12 = vector.shape_cast %11 : vector<16xf32> to vector<16x1xf32>
    %cst_4 = arith.constant 3.200000e+01 : f32
    %13 = vector.broadcast %cst_4 : f32 to vector<16x1xf32>
    %14 = arith.divf %12, %13 : vector<16x1xf32>
    %cst_5 = arith.constant 9.99999974E-6 : f32
    %15 = vector.broadcast %cst_5 : f32 to vector<16x1xf32>
    %16 = arith.addf %14, %15 : vector<16x1xf32>
    %17 = math.rsqrt %16 : vector<16x1xf32>
    %18 = vector.broadcast %17 : vector<16x1xf32> to vector<16x32xf32>
    %19 = arith.mulf %9, %18 : vector<16x32xf32>
    %c0_6 = arith.constant 0 : index
    %c0_7 = arith.constant 0 : index
    %20 = vector.load %arg6[%c0_6, %c0_7] : memref<1x32xf32, #tpu.memory_space<vmem>>, vector<1x32xf32>
    %21 = vector.broadcast %20 : vector<1x32xf32> to vector<16x32xf32>
    %22 = arith.mulf %19, %21 : vector<16x32xf32>
    %c0_8 = arith.constant 0 : index
    %c0_9 = arith.constant 0 : index
    %23 = vector.load %arg7[%c0_8, %c0_9] : memref<1x32xf32, #tpu.memory_space<vmem>>, vector<1x32xf32>
    %24 = vector.broadcast %23 : vector<1x32xf32> to vector<16x32xf32>
    %25 = arith.addf %22, %24 : vector<16x32xf32>
    %c0_10 = arith.constant 0 : index
    %c0_11 = arith.constant 0 : index
    %26 = vector.load %arg9[%c0_10, %c0_11] : memref<16x96xf32, #tpu.memory_space<vmem>>, vector<16x96xf32>
    %c0_12 = arith.constant 0 : index
    %c0_13 = arith.constant 0 : index
    %27 = vector.load %arg4[%c0_12, %c0_13] : memref<32x96xf32, #tpu.memory_space<vmem>>, vector<32x96xf32>
    %cst_14 = arith.constant dense<0.000000e+00> : vector<16x96xf32>
    %28 = tpu.matmul %25, %27, %cst_14 {dimension_numbers = #tpu.dot_dimension_numbers<[1], [0], [0], [1], [0, 0, 1, 1], [], []>} : vector<16x32xf32>, vector<32x96xf32>, vector<16x96xf32> -> vector<16x96xf32>
    %29 = arith.addf %26, %28 : vector<16x96xf32>
    %c0_15 = arith.constant 0 : index
    %c0_16 = arith.constant 0 : index
    %30 = vector.load %arg9[%c0_15, %c0_16] : memref<16x96xf32, #tpu.memory_space<vmem>>, vector<16x96xf32>
    tpu.vector_store %arg9[%c0_15, %c0_16], %29 {strides = array<i32>} : memref<16x96xf32, #tpu.memory_space<vmem>>, vector<16x96xf32>,
    %c0_i32_17 = arith.constant 0 : i32
    %31 = arith.cmpi eq, %arg2, %c0_i32_17 : i32
    %32 = arith.extui %31 : i1 to i32
    %c0_i32_18 = arith.constant 0 : i32
    %33 = arith.cmpi ne, %32, %c0_i32_18 : i32
    scf.if %33 {
      %c0_19 = arith.constant 0 : index
      %c0_20 = arith.constant 0 : index
      %34 = vector.load %arg9[%c0_19, %c0_20] : memref<16x96xf32, #tpu.memory_space<vmem>>, vector<16x96xf32>
      %c0_21 = arith.constant 0 : index
      %c0_22 = arith.constant 0 : index
      %35 = vector.load %arg5[%c0_21, %c0_22] : memref<1x96xf32, #tpu.memory_space<vmem>>, vector<1x96xf32>
      %36 = vector.broadcast %35 : vector<1x96xf32> to vector<16x96xf32>
      %37 = arith.addf %34, %36 : vector<16x96xf32>
      %c0_23 = arith.constant 0 : index
      %c0_24 = arith.constant 0 : index
      %38 = vector.load %arg8[%c0_23, %c0_24] : memref<16x96xf32, #tpu.memory_space<vmem>>, vector<16x96xf32>
      tpu.vector_store %arg8[%c0_23, %c0_24], %37 {strides = array<i32>} : memref<16x96xf32, #tpu.memory_space<vmem>>, vector<16x96xf32>,
    } else {
    }
    return
  }
  func.func @transform_0(%arg0: i32, %arg1: i32, %arg2: i32) -> (i32, i32) {
    %c0_i32 = arith.constant 0 : i32
    return %arg0, %arg2 : i32, i32
  }
  func.func @transform_1(%arg0: i32, %arg1: i32, %arg2: i32) -> (i32, i32) {
    %c0_i32 = arith.constant 0 : i32
    return %arg2, %arg1 : i32, i32
  }
  func.func @transform_2(%arg0: i32, %arg1: i32, %arg2: i32) -> (i32, i32) {
    %c0_i32 = arith.constant 0 : i32
    %c0_i32_0 = arith.constant 0 : i32
    return %c0_i32, %arg1 : i32, i32
  }
  func.func @transform_3(%arg0: i32, %arg1: i32, %arg2: i32) -> (i32, i32) {
    %c0_i32 = arith.constant 0 : i32
    %c0_i32_0 = arith.constant 0 : i32
    return %c0_i32, %arg2 : i32, i32
  }
  func.func @transform_4(%arg0: i32, %arg1: i32, %arg2: i32) -> (i32, i32) {
    %c0_i32 = arith.constant 0 : i32
    %c0_i32_0 = arith.constant 0 : i32
    return %c0_i32, %arg2 : i32, i32
  }
  func.func @transform_5(%arg0: i32, %arg1: i32, %arg2: i32) -> (i32, i32) {
    %c0_i32 = arith.constant 0 : i32
    return %arg0, %arg1 : i32, i32
  }
}

</mosaic_0001>

<bundles_post_ra>
// kernel: tpu_custom_call.1
= control target key start
LH: loop header
LB: loop body
LE: loop exit
PB: predicated region body
PF: predicated region fallthrough
CT: control target
= control target key end

     0   :  { %10 = vsyncpa [#allocation4], 0  ;;  %s375_s0 = inlined_call_operand.hbm [shape: f32[16,32], index: 0, kind: input, shape index: {}]   ;;  %s376_s1 = inlined_call_operand.hbm [shape: f32[32,96], index: 1, kind: input, shape index: {}]   ;;  %s377_s2 = inlined_call_operand.vmem [shape: f32[1,96], index: 2, kind: input, shape index: {}]   ;;  %s378_s3 = inlined_call_operand.vmem [shape: f32[1,32], index: 3, kind: input, shape index: {}]   ;;  %s379_s4 = inlined_call_operand.vmem [shape: f32[1,32], index: 4, kind: input, shape index: {}]   ;;  %s380_s5 = inlined_call_operand.hbm [shape: f32[16,96], index: 5, kind: output, shape index: {}]  }
   0x1   :  { %11 = vsyncpa [#allocation7], 0 }
   0x2   :  { %12 = vsyncpa [#allocation5], 0  ;;  %s17_s20 = sshll.u32 %s375_s0, 4  ;;  %s299_s21 = smov [#allocation3]   ;;  %s18_s20 = int_to_ptr.hbm [resolvable:$true] %s17_s20 }
   0x3   :  { %s19_s22 = sshll.u32 %s299_s21, 4  ;;  %s30_s25 = sshll.u32 %s376_s1, 4  ;;  %s20_s22 = int_to_ptr.vmem [resolvable:$true] %s19_s22  ;;  %s31_s25 = int_to_ptr.hbm [resolvable:$true] %s30_s25 }
   0x4   :  { %s300_s26 = smov 128   ;;  %s301_s27 = smov 8  }
   0x5   :  { %25 = dma.hbm_to_vmem [thread:$0]  %s18_s20, 256, %s20_s22, [#allocation4], %s300_s26, %s300_s26, %s301_s27  }
   0x6   :  { %s302_s28 = smov [#allocation6]  }
   0x7   :  { %s32_s29 = sshll.u32 %s302_s28, 4  ;;  %s33_s29 = int_to_ptr.vmem [resolvable:$true] %s32_s29 }
   0x8   :  { %38 = dma.hbm_to_vmem [thread:$0]  %s31_s25, 512, %s33_s29, [#allocation7], %s300_s26, %s300_s26, %s301_s27  }
   0x9   :  { %293 = dma.done.wait [#allocation4], 256  }
   0xa   :  { %294 = vsyncadd [#allocation4], 4294967040 }
   0xb   :  { %295 = dma.done.wait [#allocation7], 512  }
   0xc   :  { %296 = vsyncadd [#allocation7], 4294966784  ;;  %vm62_vm0 = vcmask 261120   ;;  %v60_v0 = vld [vmem:[#allocation3] sm:$0xff]  ;;  %v61_v2 = vld [vmem:[#allocation3 + $0x8] sm:$0xff]  ;;  %v303_v4 = vmov 32.0  }
   0xd   :  { %v63_v1 = vsel %vm62_vm0, %v60_v0, 0.0  ;;  %v66_v3 = vsel %vm62_vm0, %v61_v2, 0.0  ;;  %215 = vrcp.f32 %v303_v4  ;;  %v131_v21 = vld [vmem:[#allocation6 + $0x18] sm:$0xff]  ;;  %v130_v22 = vld [vmem:[#allocation6 + $0x10] sm:$0xff]  ;;  %v129_v23 = vld [vmem:[#allocation6 + $0x8] sm:$0xff]  ;;  %vm57_vm2 = vcmask 785408  }
   0xe   :  { %64 = vadd.xlane.f32.xlu0 %v63_v1  ;;  %150 = vmatpush.msra.mxu0 %v131_v21  ;;  %v128_v24 = vld [vmem:[#allocation6] sm:$0xff]  ;;  %v304_v28 = vmov 0.0   ;;  %s305_s7 = smov [#allocation8]   ;;  %s185_s11 = sshll.u32 %s380_s5, 4  ;;  %s186_s11 = int_to_ptr.hbm [resolvable:$true] %s185_s11 }
   0xf   :  { %201 = vmatpush.msra.mxu1 %v131_v21  ;;  %58 = vst.msk [vmem:[#allocation2] sm:$0xff] %vm57_vm2, %v304_v28  ;;  %v212_v40 = vld [vmem:[%s378_s3] ss:$0 sm:$0xff]  ;;  %s183_s8 = sshll.u32 %s305_s7, 4  ;;  %s184_s8 = int_to_ptr.vmem [resolvable:$true] %s183_s8 }
  0x10   :  { %151 = vmatpush.msra.mxu0 %v130_v22  ;;  %59 = vst.msk [vmem:[#allocation2 + $0x8] sm:$0xff] %vm57_vm2, %v304_v28  ;;  %v213_v44 = vld [vmem:[%s379_s4] ss:$0 sm:$0xff] }
  0x11   :  { %202 = vmatpush.msra.mxu1 %v130_v22  ;;  %v214_v58 = vld [vmem:[%s377_s2] ss:$0 sm:$0xff] }
  0x12   :  { %152 = vmatpush.msra.mxu0 %v129_v23 }
  0x13   :  { %v216_v5 = vpop.eup %215  ;;  %203 = vmatpush.msra.mxu1 %v129_v23 }
  0x14   :  { %v70_v6 = vmul.f32 32.0, %v216_v5  ;;  %vm74_vm1 = vweird.f32 %v216_v5  ;;  %153 = vmatpush.msra.mxu0 %v128_v24 }
  0x15   :  { %204 = vmatpush.msra.mxu1 %v128_v24 }
  0x16   :  { %67 = vadd.xlane.f32.xlu0 %v66_v3  ;;  %v71_v7 = vsub.f32 1.0, %v70_v6  ;;  %v126_v54 = vld [vmem:[#allocation2] sm:$0xff] }
  0x17   :  { %v127_v57 = vld [vmem:[#allocation2 + $0x8] sm:$0xff] }
  0x18   :  { %v72_v8 = vmul.f32 %v216_v5, %v71_v7 }
  0x1a   :  { %v73_v9 = vadd.f32 %v216_v5, %v72_v8 }
  0x1c   :  { %v75_v10 = vsel %vm74_vm1, %v216_v5, %v73_v9 }
  0x81   :  { %v65_v11 = vpop.xlane.xlu0 %64 }
  0x82   :  { %v76_v12 = vmul.f32 %v75_v10, %v65_v11 }
  0x84   :  { %v78_v13 = vsub.f32 %v60_v0, %v76_v12 }
  0x86   :  { %v80_v14 = vmul.f32 %v78_v13, %v78_v13 }
  0x88   :  { %v82_v15 = vsel %vm62_vm0, %v80_v14, 0.0 }
  0x89   :  { %83 = vadd.xlane.f32.xlu1 %v82_v15  ;;  %v68_v16 = vpop.xlane.xlu0 %67 }
  0x8a   :  { %v77_v17 = vmul.f32 %v75_v10, %v68_v16 }
  0x8c   :  { %v79_v18 = vsub.f32 %v61_v2, %v77_v17 }
  0x8e   :  { %v81_v19 = vmul.f32 %v79_v18, %v79_v18 }
  0x90   :  { %v85_v20 = vsel %vm62_vm0, %v81_v19, 0.0 }
  0x91   :  { %86 = vadd.xlane.f32.xlu1 %v85_v20 }
  0xfc   :  { %v84_v25 = vpop.xlane.xlu1 %83 }
  0xfd   :  { %v88_v26 = vmul.f32 %v84_v25, %v75_v10 }
  0xff   :  { %v90_v27 = vadd.f32 1e-05, %v88_v26 }
 0x101   :  { %217 = vrsqrt.f32 %v90_v27  ;;  %vm98_vm4 = vweird.f32 %v90_v27 }
 0x104   :  { %v87_v29 = vpop.xlane.xlu1 %86 }
 0x105   :  { %v89_v30 = vmul.f32 %v87_v29, %v75_v10 }
 0x107   :  { %v218_v31 = vpop.eup %217  ;;  %v91_v32 = vadd.f32 1e-05, %v89_v30 }
 0x108   :  { %v93_v33 = vmul.f32 %v218_v31, %v90_v27  ;;  %vm99_vm3 = vweird.f32 %v218_v31 }
 0x109   :  { %219 = vrsqrt.f32 %v91_v32  ;;  %vm100_vm5 = vmor %vm98_vm4, %vm99_vm3  ;;  %vm108_vm7 = vweird.f32 %v91_v32 }
 0x10a   :  { %v94_v34 = vmul.f32 %v218_v31, %v93_v33 }
 0x10c   :  { %v95_v35 = vmul.f32 0.5, %v94_v34 }
 0x10e   :  { %v96_v36 = vsub.f32 1.5, %v95_v35 }
 0x10f   :  { %v220_v37 = vpop.eup %219 }
 0x110   :  { %v97_v38 = vmul.f32 %v218_v31, %v96_v36  ;;  %v103_v39 = vmul.f32 %v220_v37, %v91_v32  ;;  %vm109_vm6 = vweird.f32 %v220_v37 }
 0x111   :  { %vm110_vm8 = vmor %vm108_vm7, %vm109_vm6 }
 0x112   :  { %v101_v41 = vsel %vm100_vm5, %v218_v31, %v97_v38  ;;  %v104_v42 = vmul.f32 %v220_v37, %v103_v39 }
 0x113   :  { %v112_v43 = vmul.f32 %v101_v41, %v78_v13 }
 0x114   :  { %v105_v45 = vmul.f32 0.5, %v104_v42 }
 0x115   :  { %v118_v46 = vmul.f32 %v212_v40, %v112_v43 }
 0x116   :  { %v106_v47 = vsub.f32 1.5, %v105_v45 }
 0x117   :  { %v124_v48 = vadd.f32 %v213_v44, %v118_v46 }
 0x118   :  { %v107_v49 = vmul.f32 %v220_v37, %v106_v47 }
 0x119   :  { %199 = vmatmul.msk.f32.vlgmr.msra.gmra.mxu0 %vm62_vm0, %v124_v48 }
 0x11a   :  { %v111_v50 = vsel %vm110_vm8, %v220_v37, %v107_v49 }
 0x11b   :  { %v113_v51 = vmul.f32 %v111_v50, %v79_v18 }
 0x11d   :  { %v119_v52 = vmul.f32 %v212_v40, %v113_v51 }
 0x11f   :  { %v125_v53 = vadd.f32 %v213_v44, %v119_v52 }
 0x121   :  { %200 = vmatmul.msk.f32.vlgmr.msra.gmra.mxu1 %vm62_vm0, %v125_v53 }
 0x196   :  { %v155_v55 = vpop.f32.mrf.mxu0 }
 0x197   :  { %v161_v56 = vadd.f32 %v155_v55, %v126_v54 }
 0x199   :  { %164 = vst.msk [vmem:[#allocation2] sm:$0xff] %vm57_vm2, %v161_v56 }
 0x19e   :  { %v158_v59 = vpop.f32.mrf.mxu1 }
 0x19f   :  { %v162_v60 = vadd.f32 %v158_v59, %v127_v57 }
 0x1a0   :  { %v169_v61 = vld [vmem:[#allocation2] sm:$0xff] }
 0x1a1   :  { %165 = vst.msk [vmem:[#allocation2 + $0x8] sm:$0xff] %vm57_vm2, %v162_v60  ;;  %v175_v62 = vadd.f32 %v214_v58, %v169_v61 }
 0x1a3   :  { %177 = vst.msk [vmem:[#allocation8] sm:$0xff] %vm57_vm2, %v175_v62 }
 0x1a8   :  { %v170_v63 = vld [vmem:[#allocation2 + $0x8] sm:$0xff] }
 0x1a9   :  { %v176_v0 = vadd.f32 %v214_v58, %v170_v63 }
 0x1ab   :  { %178 = vst.msk [vmem:[#allocation8 + $0x8] sm:$0xff] %vm57_vm2, %v176_v0 }
 0x1ac   :  { %191 = dma.vmem_to_hbm [thread:$0]  %s184_s8, 256, %s186_s11, [#allocation5], %s300_s26, %s300_s26, %s301_s27  }
 0x1ad   :  { %297 = dma.done.wait [#allocation5], 256  }
 0x1ae   :  { %298 = vsyncadd [#allocation5], 4294967040 }
 0x1af   :  { %196 = vsyncpa [#allocation4], 1 }
 0x1b0   :  { %197 = vsyncpa [#allocation7], 1 }
 0x1b1   :  { %198 = vsyncpa [#allocation5], 1 }

</bundles_post_ra>
